<compile_context>
chip_gen: v5e
topology: v5e:2x2
jax: 0.10.0
libtpu: 0.0.40
codegen_flags: <defaults>
</compile_context>

<pallas_src>
import math
from functools import partial

import jax
import jax.numpy as jnp
from jax.experimental import pallas as pl
from jax.experimental.pallas import tpu as pltpu

# Explicit scoped-VMEM limit (review): above v5e's 16 MiB / v6e's 32 MiB scoped
# defaults, below v7x's 64 MiB physical.
_VMEM_LIMIT = 48 * 1024 * 1024
_VMEM_BUDGET = 40 * 1024 * 1024   # target for per-step buffers (headroom vs limit)


def _round_up(x, m):
    return (x + m - 1) // m * m


def _pick_row_tile(n, din, e):
    """Row tile for the projection kernel: a divisor of n (n is a multiple of 8
    by construction) that keeps double-buffered inputs+outputs+weights under
    the VMEM budget.  No more 'tm = N' fallback."""
    cands = [c for c in (512, 256, 128, 64, 32, 16, 8) if c <= n and n % c == 0]
    if not cands:
        cands = [n]
    weight_bytes = 2 * 2 * din * e * 4 + 2 * 2 * e * 4      # Wv, Wk (+biases), 2 bufs
    for tm in cands:
        per_step = 3 * 2 * tm * din * 4 + 3 * 2 * tm * e * 4  # 3 inputs + 3 outputs, dbl-buffered
        if weight_bytes + per_step <= _VMEM_BUDGET:
            return tm
    return cands[-1]


# ---------------------------------------------------------------------------
# Kernel 1: fused QKV projection, head-major (H, N, Dh) outputs
# ---------------------------------------------------------------------------
def _qkv_proj_kernel(xv_ref, xk_ref, xq_ref, wv_ref, wk_ref, bv_ref, bk_ref,
                     v_hm_ref, k_hm_ref, q_hm_ref,
                     *, num_head, head_dim, mxu_dtype):
    cast = (lambda x: x.astype(mxu_dtype)) if mxu_dtype is not None else (lambda x: x)
    xv = cast(xv_ref[...])
    xk = cast(xk_ref[...])
    xq = cast(xq_ref[...])
    wv = cast(wv_ref[...])
    wk = cast(wk_ref[...])
    bv = bv_ref[...]
    bk = bk_ref[...]

    # The two Wv matmuls are issued back-to-back so Wv can stay resident in the
    # MXU weight registers (reference bug reproduced: q is projected with Wv/bv).
    pv = jnp.dot(xv, wv, preferred_element_type=jnp.float32) + bv
    pq = jnp.dot(xq, wv, preferred_element_type=jnp.float32) + bv
    pk = jnp.dot(xk, wk, preferred_element_type=jnp.float32) + bk

    # Head-major epilogue: static lane slices, so kernel 2 gets conforming
    # (1, S, Dh) blocks straight from the DMA (no in-kernel head slicing there).
    for h in range(num_head):
        sl = slice(h * head_dim, (h + 1) * head_dim)
        v_hm_ref[h] = pv[:, sl].astype(v_hm_ref.dtype)
        k_hm_ref[h] = pk[:, sl].astype(k_hm_ref.dtype)
        q_hm_ref[h] = pq[:, sl].astype(q_hm_ref.dtype)


def pallas_qkv_proj(xv, xk, xq, wv, wk, bv, bk, *, num_head, head_dim,
                    mxu_dtype=None):
    """xv/xk/xq: (N, Din); wv/wk: (Din, E); bv/bk: (E,) -> three (H, N, Dh)."""
    N, Din = xv.shape
    E = wv.shape[1]
    out_dtype = mxu_dtype if mxu_dtype is not None else xv.dtype
    tm = _pick_row_tile(N, Din, E)

    kern = partial(_qkv_proj_kernel, num_head=num_head, head_dim=head_dim,
                   mxu_dtype=mxu_dtype)
    x_spec = pl.BlockSpec((tm, Din), lambda i: (i, 0))
    w_spec = pl.BlockSpec((Din, E), lambda i: (0, 0))    # constant index -> DMA'd once
    b_spec = pl.BlockSpec((1, E), lambda i: (0, 0))
    o_spec = pl.BlockSpec((num_head, tm, head_dim), lambda i: (0, i, 0))

    return pl.pallas_call(
        kern,
        out_shape=(jax.ShapeDtypeStruct((num_head, N, head_dim), out_dtype),) * 3,
        grid=(N // tm,),
        in_specs=[x_spec, x_spec, x_spec, w_spec, w_spec, b_spec, b_spec],
        out_specs=(o_spec, o_spec, o_spec),
        compiler_params=pltpu.CompilerParams(
            dimension_semantics=("parallel",),
            vmem_limit_bytes=_VMEM_LIMIT),
    )(xv, xk, xq, wv, wk, bv.reshape(1, E), bk.reshape(1, E))


# ---------------------------------------------------------------------------
# Kernel 2: per-(batch, head) attention + per-head output-projection accumulation
#   q/k/v head-major: (H, N=B*S, Dh);  mask: (mB, S, S) int8 (0 => masked)
#   w_out: (E, Dout) sliced (Dh, Dout) per head by the DMA;  b_out: (1, Dout)
#   outputs: values (B, S, Dout), attention weights (B, H, S, S) f32
# ---------------------------------------------------------------------------
def _attn_kernel(q_ref, k_ref, v_ref, m_ref, wo_ref, bo_ref,
                 out_ref, attn_ref, acc_ref,
                 *, num_head, scale, mxu_dtype, exp_dtype):
    h = pl.program_id(1)

    @pl.when(h == 0)
    def _init():
        acc_ref[...] = jnp.zeros_like(acc_ref)

    cast = (lambda x: x.astype(mxu_dtype)) if mxu_dtype is not None else (lambda x: x)

    q = cast(q_ref[0])                     # (S, Dh)
    k = cast(k_ref[0])
    v = cast(v_ref[0])

    # scores = (q / sqrt(Dh)) @ k^T, contracting Dh directly (no k transpose).
    s = jax.lax.dot_general(q * scale, k,
                            dimension_numbers=(((1,), (1,)), ((), ())),
                            preferred_element_type=jnp.float32)
    # Finite sentinel: fully-masked rows give uniform weights rather than the
    # reference's NaN (documented semantic difference; also makes S-padding safe).
    s = jnp.where(m_ref[0] == 0, jnp.float32(-1e30), s)

    # Numerically stable softmax; exact reciprocal so the externally visible
    # weights sum to 1 (review correctness item).
    s_max = jnp.max(s, axis=-1, keepdims=True)
    sub = s - s_max
    e = jnp.exp(sub.astype(exp_dtype)) if exp_dtype is not None else jnp.exp(sub)
    e32 = e.astype(jnp.float32)
    denom = jnp.sum(e32, axis=-1, keepdims=True)
    p = e32 * pl.reciprocal(denom, approx=False)          # (S, S) f32

    attn_ref[0, 0] = p                                    # f32 weights output

    # Per-head context and per-head slice of the output projection, accumulated
    # across the (arbitrary) head grid axis — no (S, E) ctx staging.
    ctx = jnp.dot(cast(p), v, preferred_element_type=jnp.float32)          # (S, Dh)
    acc_ref[...] += jnp.dot(cast(ctx), cast(wo_ref[...]),
                            preferred_element_type=jnp.float32)            # (S, Dout)

    @pl.when(h == num_head - 1)
    def _finish():
        out_ref[0] = (acc_ref[...] + bo_ref[...]).astype(out_ref.dtype)


def pallas_attention(q_hm, k_hm, v_hm, mask_i8, w_out, b_out, *, batch, seq,
                     num_head, head_dim, out_dtype, mxu_dtype=None, exp_dtype=None):
    E, Dout = w_out.shape
    mB = mask_i8.shape[0]
    kern = partial(_attn_kernel, num_head=num_head, scale=1.0 / math.sqrt(head_dim),
                   mxu_dtype=mxu_dtype, exp_dtype=exp_dtype)

    qkv_spec = pl.BlockSpec((1, seq, head_dim), lambda b, h: (h, b, 0))
    # Batch-invariant masks are passed as (1, S, S) and DMA'd once (review item).
    mask_idx = (lambda b, h: (0, 0, 0)) if mB == 1 else (lambda b, h: (b, 0, 0))

    return pl.pallas_call(
        kern,
        out_shape=(
            jax.ShapeDtypeStruct((batch, seq, Dout), out_dtype),
            jax.ShapeDtypeStruct((batch, num_head, seq, seq), jnp.float32),
        ),
        grid=(batch, num_head),
        in_specs=[
            qkv_spec, qkv_spec, qkv_spec,
            pl.BlockSpec((1, seq, seq), mask_idx),
            pl.BlockSpec((head_dim, Dout), lambda b, h: (h, 0)),   # per-head Wout slice via DMA
            pl.BlockSpec((1, Dout), lambda b, h: (0, 0)),          # fetched once
        ],
        out_specs=(
            pl.BlockSpec((1, seq, Dout), lambda b, h: (b, 0, 0)),      # revisited across h
            pl.BlockSpec((1, 1, seq, seq), lambda b, h: (b, h, 0, 0)),
        ),
        scratch_shapes=[pltpu.VMEM((seq, Dout), jnp.float32)],
        # head axis accumulates into the scratch / revisits the values block -> arbitrary
        compiler_params=pltpu.CompilerParams(
            dimension_semantics=("parallel", "arbitrary"),
            vmem_limit_bytes=_VMEM_LIMIT),
    )(q_hm, k_hm, v_hm, mask_i8, w_out, b_out.reshape(1, Dout))


# ---------------------------------------------------------------------------
# Thin JAX glue (no HBM transposes of activations; padding handled here)
# ---------------------------------------------------------------------------
def _prepare_mask(mask, seq, seq_pad):
    m = jnp.asarray(mask)
    if m.ndim == 4:
        # (B or 1, H or 1, S, S).  A single per-batch mask is assumed.
        # TODO(synk): genuinely per-head masks would need an H-expanded mask path.
        m = m[:, 0]
    elif m.ndim == 2:
        m = m[None]
    mi = (m != 0).astype(jnp.int8)                 # compact int8, no f32 broadcast traffic
    if seq_pad != seq:
        pad = seq_pad - seq
        mi = jnp.pad(mi, [(0, 0), (0, pad), (0, pad)])   # padded keys are masked out
    return mi


def multi_head_attention(params, q, k, v, mask, num_head, *,
                         mxu_dtype=None, exp_dtype=None):
    """q, k, v: (B, S, input_dim); mask broadcastable to (B, 1, S, S).
    Returns (values (B, S, input_dim), weights (B, H, S, S) float32).
    mxu_dtype / exp_dtype = jnp.bfloat16 enables bf16 MXU / softmax-exp feeds
    (recommended on v6e / v7x; keep None on v5e)."""
    B, S, input_dim = v.shape
    embed_dim = params["Wv_w"].shape[1]
    head_dim = embed_dim // num_head
    in_dtype = v.dtype

    # Lane-dense attention-weights stores: pad S to a multiple of 128 for long
    # sequences (e.g. ViT 197 -> 256), multiple of 8 otherwise.
    S_pad = _round_up(S, 128) if S > 128 else _round_up(S, 8)
    if S_pad != S:
        pad = [(0, 0), (0, S_pad - S), (0, 0)]
        q, k, v = jnp.pad(q, pad), jnp.pad(k, pad), jnp.pad(v, pad)
    N = B * S_pad

    # Single fused projection launch; outputs are head-major (H, N, Dh).
    v_hm, k_hm, q_hm = pallas_qkv_proj(
        v.reshape(N, input_dim), k.reshape(N, input_dim), q.reshape(N, input_dim),
        params["Wv_w"], params["Wk_w"], params["Wv_b"], params["Wk_b"],
        num_head=num_head, head_dim=head_dim, mxu_dtype=mxu_dtype)

    mask_i8 = _prepare_mask(mask, S, S_pad)

    out, weights = pallas_attention(
        q_hm, k_hm, v_hm, mask_i8, params["out_w"], params["out_b"],
        batch=B, seq=S_pad, num_head=num_head, head_dim=head_dim,
        out_dtype=in_dtype, mxu_dtype=mxu_dtype, exp_dtype=exp_dtype)

    if S_pad != S:
        out = out[:, :S, :]
        weights = weights[:, :, :S, :S]
    return out, weights


# ---------------------------------------------------------------------------
# Pure-JAX reference (mirrors the PyTorch module) for sanity checks
# ---------------------------------------------------------------------------
def reference_mha(params, q, k, v, mask, num_head):
    B, S, input_dim = v.shape
    embed_dim = params["Wv_w"].shape[1]
    head_dim = embed_dim // num_head
    lin = lambda x, w, b: x @ w + b
    v_p = lin(v, params["Wv_w"], params["Wv_b"])
    k_p = lin(k, params["Wk_w"], params["Wk_b"])
    q_p = lin(q, params["Wv_w"], params["Wv_b"])  # reference bug reproduced
    th = lambda x: x.reshape(B, S, num_head, head_dim).transpose(0, 2, 1, 3)
    qh, kh, vh = th(q_p), th(k_p), th(v_p)
    score = jnp.einsum("bhqd,bhkd->bhqk", qh, kh) / math.sqrt(head_dim)
    score = jnp.where(jnp.broadcast_to(mask, score.shape) == 0, -jnp.inf, score)
    attn = jax.nn.softmax(score, axis=-1)
    ctx = jnp.einsum("bhqk,bhkd->bhqd", attn, vh)
    ctx = ctx.transpose(0, 2, 1, 3).reshape(B, S, embed_dim)
    out = lin(ctx, params["out_w"], params["out_b"])
    return out, attn


if __name__ == "__main__":
    def make_params(key, input_dim, embed_dim):
        ks = jax.random.split(key, 8)

        def linear_init(kw, kb, din, dout):
            bound = 1.0 / math.sqrt(din)
            w = jax.random.uniform(kw, (din, dout), jnp.float32, -bound, bound)
            b = jax.random.uniform(kb, (dout,), jnp.float32, -bound, bound)
            return w, b

        Wv_w, Wv_b = linear_init(ks[0], ks[1], input_dim, embed_dim)
        Wk_w, Wk_b = linear_init(ks[2], ks[3], input_dim, embed_dim)
        Wq_w, Wq_b = linear_init(ks[4], ks[5], input_dim, embed_dim)  # unused in forward
        out_w, out_b = linear_init(ks[6], ks[7], embed_dim, input_dim)
        return dict(Wv_w=Wv_w, Wv_b=Wv_b, Wk_w=Wk_w, Wk_b=Wk_b,
                    Wq_w=Wq_w, Wq_b=Wq_b, out_w=out_w, out_b=out_b)

    def run_case(name, B, S, input_dim, embed_dim, num_head, batch_mask,
                 mxu_dtype, exp_dtype, atol, rtol):
        key = jax.random.PRNGKey(0)
        kp, kq, kk, kv, km = jax.random.split(key, 5)
        params = make_params(kp, input_dim, embed_dim)
        q = jax.random.normal(kq, (B, S, input_dim), jnp.float32)
        k = jax.random.normal(kk, (B, S, input_dim), jnp.float32)
        v = jax.random.normal(kv, (B, S, input_dim), jnp.float32)
        if batch_mask:
            mask = jax.random.bernoulli(km, 0.7, (B, 1, S, S)).astype(jnp.float32)
            idx = jnp.arange(S)
            mask = mask.at[:, :, idx, idx].set(1.0)       # no fully-masked rows
        else:
            mask = jnp.tril(jnp.ones((S, S), jnp.float32))[None, None]  # (1,1,S,S)

        out, weights = multi_head_attention(params, q, k, v, mask, num_head,
                                            mxu_dtype=mxu_dtype, exp_dtype=exp_dtype)
        out = jax.block_until_ready(out)
        weights = jax.block_until_ready(weights)

        ref_out, ref_w = reference_mha(params, q, k, v, mask, num_head)
        assert out.shape == (B, S, input_dim), (name, out.shape)
        assert weights.shape == (B, num_head, S, S), (name, weights.shape)
        assert jnp.allclose(out, ref_out, atol=atol, rtol=rtol), name
        assert jnp.allclose(weights, ref_w, atol=atol, rtol=rtol), name

    # f32 path (faithful semantics), batch-invariant causal mask (shared-mask path)
    run_case("f32", B=2, S=8, input_dim=32, embed_dim=32, num_head=4,
             batch_mask=False, mxu_dtype=None, exp_dtype=None, atol=5e-3, rtol=5e-3)
    # f32 path exercising the S-padding (S=12 -> 16) and per-batch mask path
    run_case("f32_padded", B=2, S=12, input_dim=32, embed_dim=32, num_head=4,
             batch_mask=True, mxu_dtype=None, exp_dtype=None, atol=5e-3, rtol=5e-3)
    # bf16 MXU / EUP feeds (v6e / v7x fast path), loose tolerance
    run_case("bf16_mxu", B=2, S=8, input_dim=32, embed_dim=32, num_head=4,
             batch_mask=False, mxu_dtype=jnp.bfloat16, exp_dtype=jnp.bfloat16,
             atol=1e-1, rtol=1e-1)

    print("KERNEL_OK")
</pallas_src>

<mosaic_0001>
module attributes {stable_mosaic.version = 11 : i64} {
  func.func @_qkv_proj_kernel(%arg0: i32, %arg1: memref<16x32xf32, #tpu.memory_space<vmem>>, %arg2: memref<16x32xf32, #tpu.memory_space<vmem>>, %arg3: memref<16x32xf32, #tpu.memory_space<vmem>>, %arg4: memref<32x32xf32, #tpu.memory_space<vmem>>, %arg5: memref<32x32xf32, #tpu.memory_space<vmem>>, %arg6: memref<1x32xf32, #tpu.memory_space<vmem>>, %arg7: memref<1x32xf32, #tpu.memory_space<vmem>>, %arg8: memref<4x16x8xf32, #tpu.memory_space<vmem>>, %arg9: memref<4x16x8xf32, #tpu.memory_space<vmem>>, %arg10: memref<4x16x8xf32, #tpu.memory_space<vmem>>) attributes {dimension_semantics = [#tpu.dimension_semantics<parallel>], iteration_bounds = array<i64: 1>, scalar_prefetch = 0 : i64, scratch_operands = 0 : i64, tpu.core_type = #tpu.core_type<tc>, window_params = [{transform_indices = @transform_0, window_bounds = array<i64: 16, 32>}, {transform_indices = @transform_1, window_bounds = array<i64: 16, 32>}, {transform_indices = @transform_2, window_bounds = array<i64: 16, 32>}, {pipeline_mode = #tpu.pipeline_mode<synchronous>, transform_indices = @transform_3, window_bounds = array<i64: 32, 32>}, {pipeline_mode = #tpu.pipeline_mode<synchronous>, transform_indices = @transform_4, window_bounds = array<i64: 32, 32>}, {pipeline_mode = #tpu.pipeline_mode<synchronous>, transform_indices = @transform_5, window_bounds = array<i64: 1, 32>}, {pipeline_mode = #tpu.pipeline_mode<synchronous>, transform_indices = @transform_6, window_bounds = array<i64: 1, 32>}, {transform_indices = @transform_7, window_bounds = array<i64: 4, 16, 8>}, {transform_indices = @transform_8, window_bounds = array<i64: 4, 16, 8>}, {transform_indices = @transform_9, window_bounds = array<i64: 4, 16, 8>}]} {
    %c0 = arith.constant 0 : index
    %c0_0 = arith.constant 0 : index
    %0 = vector.load %arg1[%c0, %c0_0] : memref<16x32xf32, #tpu.memory_space<vmem>>, vector<16x32xf32>
    %c0_1 = arith.constant 0 : index
    %c0_2 = arith.constant 0 : index
    %1 = vector.load %arg2[%c0_1, %c0_2] : memref<16x32xf32, #tpu.memory_space<vmem>>, vector<16x32xf32>
    %c0_3 = arith.constant 0 : index
    %c0_4 = arith.constant 0 : index
    %2 = vector.load %arg3[%c0_3, %c0_4] : memref<16x32xf32, #tpu.memory_space<vmem>>, vector<16x32xf32>
    %c0_5 = arith.constant 0 : index
    %c0_6 = arith.constant 0 : index
    %3 = vector.load %arg4[%c0_5, %c0_6] : memref<32x32xf32, #tpu.memory_space<vmem>>, vector<32x32xf32>
    %c0_7 = arith.constant 0 : index
    %c0_8 = arith.constant 0 : index
    %4 = vector.load %arg5[%c0_7, %c0_8] : memref<32x32xf32, #tpu.memory_space<vmem>>, vector<32x32xf32>
    %c0_9 = arith.constant 0 : index
    %c0_10 = arith.constant 0 : index
    %5 = vector.load %arg6[%c0_9, %c0_10] : memref<1x32xf32, #tpu.memory_space<vmem>>, vector<1x32xf32>
    %c0_11 = arith.constant 0 : index
    %c0_12 = arith.constant 0 : index
    %6 = vector.load %arg7[%c0_11, %c0_12] : memref<1x32xf32, #tpu.memory_space<vmem>>, vector<1x32xf32>
    %cst = arith.constant dense<0.000000e+00> : vector<16x32xf32>
    %7 = tpu.matmul %0, %3, %cst {dimension_numbers = #tpu.dot_dimension_numbers<[1], [0], [0], [1], [0, 0, 1, 1], [], []>} : vector<16x32xf32>, vector<32x32xf32>, vector<16x32xf32> -> vector<16x32xf32>
    %8 = vector.broadcast %5 : vector<1x32xf32> to vector<16x32xf32>
    %9 = arith.addf %7, %8 : vector<16x32xf32>
    %cst_13 = arith.constant dense<0.000000e+00> : vector<16x32xf32>
    %10 = tpu.matmul %2, %3, %cst_13 {dimension_numbers = #tpu.dot_dimension_numbers<[1], [0], [0], [1], [0, 0, 1, 1], [], []>} : vector<16x32xf32>, vector<32x32xf32>, vector<16x32xf32> -> vector<16x32xf32>
    %11 = vector.broadcast %5 : vector<1x32xf32> to vector<16x32xf32>
    %12 = arith.addf %10, %11 : vector<16x32xf32>
    %cst_14 = arith.constant dense<0.000000e+00> : vector<16x32xf32>
    %13 = tpu.matmul %1, %4, %cst_14 {dimension_numbers = #tpu.dot_dimension_numbers<[1], [0], [0], [1], [0, 0, 1, 1], [], []>} : vector<16x32xf32>, vector<32x32xf32>, vector<16x32xf32> -> vector<16x32xf32>
    %14 = vector.broadcast %6 : vector<1x32xf32> to vector<16x32xf32>
    %15 = arith.addf %13, %14 : vector<16x32xf32>
    %16 = vector.extract_strided_slice %9 {offsets = [0, 0], sizes = [16, 8], strides = [1, 1]} : vector<16x32xf32> to vector<16x8xf32>
    %c0_15 = arith.constant 0 : index
    %c0_16 = arith.constant 0 : index
    %c0_17 = arith.constant 0 : index
    %17 = vector.load %arg8[%c0_15, %c0_16, %c0_17] : memref<4x16x8xf32, #tpu.memory_space<vmem>>, vector<1x16x8xf32>
    %18 = vector.shape_cast %17 : vector<1x16x8xf32> to vector<16x8xf32>
    %19 = vector.shape_cast %16 : vector<16x8xf32> to vector<1x16x8xf32>
    tpu.vector_store %arg8[%c0_15, %c0_16, %c0_17], %19 {strides = array<i32>} : memref<4x16x8xf32, #tpu.memory_space<vmem>>, vector<1x16x8xf32>,
    %20 = vector.extract_strided_slice %15 {offsets = [0, 0], sizes = [16, 8], strides = [1, 1]} : vector<16x32xf32> to vector<16x8xf32>
    %c0_18 = arith.constant 0 : index
    %c0_19 = arith.constant 0 : index
    %c0_20 = arith.constant 0 : index
    %21 = vector.load %arg9[%c0_18, %c0_19, %c0_20] : memref<4x16x8xf32, #tpu.memory_space<vmem>>, vector<1x16x8xf32>
    %22 = vector.shape_cast %21 : vector<1x16x8xf32> to vector<16x8xf32>
    %23 = vector.shape_cast %20 : vector<16x8xf32> to vector<1x16x8xf32>
    tpu.vector_store %arg9[%c0_18, %c0_19, %c0_20], %23 {strides = array<i32>} : memref<4x16x8xf32, #tpu.memory_space<vmem>>, vector<1x16x8xf32>,
    %24 = vector.extract_strided_slice %12 {offsets = [0, 0], sizes = [16, 8], strides = [1, 1]} : vector<16x32xf32> to vector<16x8xf32>
    %c0_21 = arith.constant 0 : index
    %c0_22 = arith.constant 0 : index
    %c0_23 = arith.constant 0 : index
    %25 = vector.load %arg10[%c0_21, %c0_22, %c0_23] : memref<4x16x8xf32, #tpu.memory_space<vmem>>, vector<1x16x8xf32>
    %26 = vector.shape_cast %25 : vector<1x16x8xf32> to vector<16x8xf32>
    %27 = vector.shape_cast %24 : vector<16x8xf32> to vector<1x16x8xf32>
    tpu.vector_store %arg10[%c0_21, %c0_22, %c0_23], %27 {strides = array<i32>} : memref<4x16x8xf32, #tpu.memory_space<vmem>>, vector<1x16x8xf32>,
    %28 = vector.extract_strided_slice %9 {offsets = [0, 8], sizes = [16, 8], strides = [1, 1]} : vector<16x32xf32> to vector<16x8xf32>
    %c1 = arith.constant 1 : index
    %c0_24 = arith.constant 0 : index
    %c0_25 = arith.constant 0 : index
    %29 = vector.load %arg8[%c1, %c0_24, %c0_25] : memref<4x16x8xf32, #tpu.memory_space<vmem>>, vector<1x16x8xf32>
    %30 = vector.shape_cast %29 : vector<1x16x8xf32> to vector<16x8xf32>
    %31 = vector.shape_cast %28 : vector<16x8xf32> to vector<1x16x8xf32>
    tpu.vector_store %arg8[%c1, %c0_24, %c0_25], %31 {strides = array<i32>} : memref<4x16x8xf32, #tpu.memory_space<vmem>>, vector<1x16x8xf32>,
    %32 = vector.extract_strided_slice %15 {offsets = [0, 8], sizes = [16, 8], strides = [1, 1]} : vector<16x32xf32> to vector<16x8xf32>
    %c1_26 = arith.constant 1 : index
    %c0_27 = arith.constant 0 : index
    %c0_28 = arith.constant 0 : index
    %33 = vector.load %arg9[%c1_26, %c0_27, %c0_28] : memref<4x16x8xf32, #tpu.memory_space<vmem>>, vector<1x16x8xf32>
    %34 = vector.shape_cast %33 : vector<1x16x8xf32> to vector<16x8xf32>
    %35 = vector.shape_cast %32 : vector<16x8xf32> to vector<1x16x8xf32>
    tpu.vector_store %arg9[%c1_26, %c0_27, %c0_28], %35 {strides = array<i32>} : memref<4x16x8xf32, #tpu.memory_space<vmem>>, vector<1x16x8xf32>,
    %36 = vector.extract_strided_slice %12 {offsets = [0, 8], sizes = [16, 8], strides = [1, 1]} : vector<16x32xf32> to vector<16x8xf32>
    %c1_29 = arith.constant 1 : index
    %c0_30 = arith.constant 0 : index
    %c0_31 = arith.constant 0 : index
    %37 = vector.load %arg10[%c1_29, %c0_30, %c0_31] : memref<4x16x8xf32, #tpu.memory_space<vmem>>, vector<1x16x8xf32>
    %38 = vector.shape_cast %37 : vector<1x16x8xf32> to vector<16x8xf32>
    %39 = vector.shape_cast %36 : vector<16x8xf32> to vector<1x16x8xf32>
    tpu.vector_store %arg10[%c1_29, %c0_30, %c0_31], %39 {strides = array<i32>} : memref<4x16x8xf32, #tpu.memory_space<vmem>>, vector<1x16x8xf32>,
    %40 = vector.extract_strided_slice %9 {offsets = [0, 16], sizes = [16, 8], strides = [1, 1]} : vector<16x32xf32> to vector<16x8xf32>
    %c2 = arith.constant 2 : index
    %c0_32 = arith.constant 0 : index
    %c0_33 = arith.constant 0 : index
    %41 = vector.load %arg8[%c2, %c0_32, %c0_33] : memref<4x16x8xf32, #tpu.memory_space<vmem>>, vector<1x16x8xf32>
    %42 = vector.shape_cast %41 : vector<1x16x8xf32> to vector<16x8xf32>
    %43 = vector.shape_cast %40 : vector<16x8xf32> to vector<1x16x8xf32>
    tpu.vector_store %arg8[%c2, %c0_32, %c0_33], %43 {strides = array<i32>} : memref<4x16x8xf32, #tpu.memory_space<vmem>>, vector<1x16x8xf32>,
    %44 = vector.extract_strided_slice %15 {offsets = [0, 16], sizes = [16, 8], strides = [1, 1]} : vector<16x32xf32> to vector<16x8xf32>
    %c2_34 = arith.constant 2 : index
    %c0_35 = arith.constant 0 : index
    %c0_36 = arith.constant 0 : index
    %45 = vector.load %arg9[%c2_34, %c0_35, %c0_36] : memref<4x16x8xf32, #tpu.memory_space<vmem>>, vector<1x16x8xf32>
    %46 = vector.shape_cast %45 : vector<1x16x8xf32> to vector<16x8xf32>
    %47 = vector.shape_cast %44 : vector<16x8xf32> to vector<1x16x8xf32>
    tpu.vector_store %arg9[%c2_34, %c0_35, %c0_36], %47 {strides = array<i32>} : memref<4x16x8xf32, #tpu.memory_space<vmem>>, vector<1x16x8xf32>,
    %48 = vector.extract_strided_slice %12 {offsets = [0, 16], sizes = [16, 8], strides = [1, 1]} : vector<16x32xf32> to vector<16x8xf32>
    %c2_37 = arith.constant 2 : index
    %c0_38 = arith.constant 0 : index
    %c0_39 = arith.constant 0 : index
    %49 = vector.load %arg10[%c2_37, %c0_38, %c0_39] : memref<4x16x8xf32, #tpu.memory_space<vmem>>, vector<1x16x8xf32>
    %50 = vector.shape_cast %49 : vector<1x16x8xf32> to vector<16x8xf32>
    %51 = vector.shape_cast %48 : vector<16x8xf32> to vector<1x16x8xf32>
    tpu.vector_store %arg10[%c2_37, %c0_38, %c0_39], %51 {strides = array<i32>} : memref<4x16x8xf32, #tpu.memory_space<vmem>>, vector<1x16x8xf32>,
    %52 = vector.extract_strided_slice %9 {offsets = [0, 24], sizes = [16, 8], strides = [1, 1]} : vector<16x32xf32> to vector<16x8xf32>
    %c3 = arith.constant 3 : index
    %c0_40 = arith.constant 0 : index
    %c0_41 = arith.constant 0 : index
    %53 = vector.load %arg8[%c3, %c0_40, %c0_41] : memref<4x16x8xf32, #tpu.memory_space<vmem>>, vector<1x16x8xf32>
    %54 = vector.shape_cast %53 : vector<1x16x8xf32> to vector<16x8xf32>
    %55 = vector.shape_cast %52 : vector<16x8xf32> to vector<1x16x8xf32>
    tpu.vector_store %arg8[%c3, %c0_40, %c0_41], %55 {strides = array<i32>} : memref<4x16x8xf32, #tpu.memory_space<vmem>>, vector<1x16x8xf32>,
    %56 = vector.extract_strided_slice %15 {offsets = [0, 24], sizes = [16, 8], strides = [1, 1]} : vector<16x32xf32> to vector<16x8xf32>
    %c3_42 = arith.constant 3 : index
    %c0_43 = arith.constant 0 : index
    %c0_44 = arith.constant 0 : index
    %57 = vector.load %arg9[%c3_42, %c0_43, %c0_44] : memref<4x16x8xf32, #tpu.memory_space<vmem>>, vector<1x16x8xf32>
    %58 = vector.shape_cast %57 : vector<1x16x8xf32> to vector<16x8xf32>
    %59 = vector.shape_cast %56 : vector<16x8xf32> to vector<1x16x8xf32>
    tpu.vector_store %arg9[%c3_42, %c0_43, %c0_44], %59 {strides = array<i32>} : memref<4x16x8xf32, #tpu.memory_space<vmem>>, vector<1x16x8xf32>,
    %60 = vector.extract_strided_slice %12 {offsets = [0, 24], sizes = [16, 8], strides = [1, 1]} : vector<16x32xf32> to vector<16x8xf32>
    %c3_45 = arith.constant 3 : index
    %c0_46 = arith.constant 0 : index
    %c0_47 = arith.constant 0 : index
    %61 = vector.load %arg10[%c3_45, %c0_46, %c0_47] : memref<4x16x8xf32, #tpu.memory_space<vmem>>, vector<1x16x8xf32>
    %62 = vector.shape_cast %61 : vector<1x16x8xf32> to vector<16x8xf32>
    %63 = vector.shape_cast %60 : vector<16x8xf32> to vector<1x16x8xf32>
    tpu.vector_store %arg10[%c3_45, %c0_46, %c0_47], %63 {strides = array<i32>} : memref<4x16x8xf32, #tpu.memory_space<vmem>>, vector<1x16x8xf32>,
    return
  }
  func.func @transform_0(%arg0: i32) -> (i32, i32) {
    %c0_i32 = arith.constant 0 : i32
    %c0_i32_0 = arith.constant 0 : i32
    return %arg0, %c0_i32 : i32, i32
  }
  func.func @transform_1(%arg0: i32) -> (i32, i32) {
    %c0_i32 = arith.constant 0 : i32
    %c0_i32_0 = arith.constant 0 : i32
    return %arg0, %c0_i32 : i32, i32
  }
  func.func @transform_2(%arg0: i32) -> (i32, i32) {
    %c0_i32 = arith.constant 0 : i32
    %c0_i32_0 = arith.constant 0 : i32
    return %arg0, %c0_i32 : i32, i32
  }
  func.func @transform_3(%arg0: i32) -> (i32, i32) {
    %c0_i32 = arith.constant 0 : i32
    %c0_i32_0 = arith.constant 0 : i32
    %c0_i32_1 = arith.constant 0 : i32
    return %c0_i32, %c0_i32_0 : i32, i32
  }
  func.func @transform_4(%arg0: i32) -> (i32, i32) {
    %c0_i32 = arith.constant 0 : i32
    %c0_i32_0 = arith.constant 0 : i32
    %c0_i32_1 = arith.constant 0 : i32
    return %c0_i32, %c0_i32_0 : i32, i32
  }
  func.func @transform_5(%arg0: i32) -> (i32, i32) {
    %c0_i32 = arith.constant 0 : i32
    %c0_i32_0 = arith.constant 0 : i32
    %c0_i32_1 = arith.constant 0 : i32
    return %c0_i32, %c0_i32_0 : i32, i32
  }
  func.func @transform_6(%arg0: i32) -> (i32, i32) {
    %c0_i32 = arith.constant 0 : i32
    %c0_i32_0 = arith.constant 0 : i32
    %c0_i32_1 = arith.constant 0 : i32
    return %c0_i32, %c0_i32_0 : i32, i32
  }
  func.func @transform_7(%arg0: i32) -> (i32, i32, i32) {
    %c0_i32 = arith.constant 0 : i32
    %c0_i32_0 = arith.constant 0 : i32
    %c0_i32_1 = arith.constant 0 : i32
    return %c0_i32, %arg0, %c0_i32_0 : i32, i32, i32
  }
  func.func @transform_8(%arg0: i32) -> (i32, i32, i32) {
    %c0_i32 = arith.constant 0 : i32
    %c0_i32_0 = arith.constant 0 : i32
    %c0_i32_1 = arith.constant 0 : i32
    return %c0_i32, %arg0, %c0_i32_0 : i32, i32, i32
  }
  func.func @transform_9(%arg0: i32) -> (i32, i32, i32) {
    %c0_i32 = arith.constant 0 : i32
    %c0_i32_0 = arith.constant 0 : i32
    %c0_i32_1 = arith.constant 0 : i32
    return %c0_i32, %arg0, %c0_i32_0 : i32, i32, i32
  }
}

</mosaic_0001>

<bundles_post_ra>
// kernel: tpu_custom_call.1
= control target key start
LH: loop header
LB: loop body
LE: loop exit
PB: predicated region body
PF: predicated region fallthrough
CT: control target
= control target key end

     0   :  { %15 = vsyncpa [#allocation3], 0  ;;  %s681_s0 = inlined_call_operand.hbm [shape: f32[16,32], index: 0, kind: input, shape index: {}]   ;;  %s682_s1 = inlined_call_operand.hbm [shape: f32[16,32], index: 1, kind: input, shape index: {}]   ;;  %s683_s2 = inlined_call_operand.hbm [shape: f32[16,32], index: 2, kind: input, shape index: {}]   ;;  %s684_s3 = inlined_call_operand.hbm [shape: f32[32,32], index: 3, kind: input, shape index: {}]   ;;  %s685_s4 = inlined_call_operand.hbm [shape: f32[32,32], index: 4, kind: input, shape index: {}]   ;;  %s686_s5 = inlined_call_operand.vmem [shape: f32[1,32], index: 5, kind: input, shape index: {}]   ;;  %s687_s6 = inlined_call_operand.vmem [shape: f32[1,32], index: 6, kind: input, shape index: {}]   ;;  %s688_s7 = inlined_call_operand.vmem [shape: f32[4,16,8], index: 7, kind: output, shape index: {0}]   ;;  %s689_s8 = inlined_call_operand.vmem [shape: f32[4,16,8], index: 8, kind: output, shape index: {1}]   ;;  %s690_s9 = inlined_call_operand.vmem [shape: f32[4,16,8], index: 9, kind: output, shape index: {2}]  }
   0x1   :  { %16 = vsyncpa [#allocation5], 0 }
   0x2   :  { %17 = vsyncpa [#allocation8], 0  ;;  %s35_s11 = sshll.u32 %s682_s1, 4  ;;  %s492_s12 = smov [#allocation4]   ;;  %s36_s11 = int_to_ptr.hbm [resolvable:$true] %s35_s11 }
   0x3   :  { %s37_s13 = sshll.u32 %s492_s12, 4  ;;  %s61_s16 = sshll.u32 %s684_s3, 4  ;;  %s38_s13 = int_to_ptr.vmem [resolvable:$true] %s37_s13  ;;  %s62_s16 = int_to_ptr.hbm [resolvable:$true] %s61_s16 }
   0x4   :  { %s493_s17 = smov 128   ;;  %s494_s18 = smov 8  }
   0x5   :  { %43 = dma.hbm_to_vmem [thread:$0]  %s36_s11, 256, %s38_s13, [#allocation5], %s493_s17, %s493_s17, %s494_s18  }
   0x6   :  { %s495_s19 = smov [#allocation7]   ;;  %s22_s23 = sshll.u32 %s681_s0, 4  ;;  %s23_s23 = int_to_ptr.hbm [resolvable:$true] %s22_s23 }
   0x7   :  { %s63_s20 = sshll.u32 %s495_s19, 4  ;;  %s48_s25 = sshll.u32 %s683_s2, 4  ;;  %s64_s20 = int_to_ptr.vmem [resolvable:$true] %s63_s20  ;;  %s49_s25 = int_to_ptr.hbm [resolvable:$true] %s48_s25 }
   0x8   :  { %69 = dma.hbm_to_vmem [thread:$0]  %s62_s16, 512, %s64_s20, [#allocation8], %s493_s17, %s493_s17, %s494_s18  }
   0x9   :  { %s496_s26 = smov [#allocation2]   ;;  %s497_s3 = smov [#allocation6]  }
   0xa   :  { %s24_s27 = sshll.u32 %s496_s26, 4  ;;  %s50_s28 = sshll.u32 %s497_s3, 4  ;;  %s25_s27 = int_to_ptr.vmem [resolvable:$true] %s24_s27  ;;  %s51_s28 = int_to_ptr.vmem [resolvable:$true] %s50_s28 }
   0xb   :  { %30 = dma.hbm_to_vmem [thread:$0]  %s23_s23, 256, %s25_s27, [#allocation3], %s493_s17, %s493_s17, %s494_s18  }
   0xc   :  { %s74_s10 = sshll.u32 %s685_s4, 4  ;;  %s498_s0 = smov [#allocation9]   ;;  %s75_s10 = int_to_ptr.hbm [resolvable:$true] %s74_s10 }
   0xd   :  { %56 = dma.hbm_to_vmem [thread:$0]  %s49_s25, 256, %s51_s28, [#allocation5], %s493_s17, %s493_s17, %s494_s18  }
   0xe   :  { %s76_s11 = sshll.u32 %s498_s0, 4  ;;  %s77_s11 = int_to_ptr.vmem [resolvable:$true] %s76_s11 }
   0xf   :  { %82 = dma.hbm_to_vmem [thread:$0]  %s75_s10, 512, %s77_s11, [#allocation8], %s493_s17, %s493_s17, %s494_s18  }
  0x10   :  { %486 = dma.done.wait [#allocation3], 256  }
  0x11   :  { %487 = vsyncadd [#allocation3], 4294967040 }
  0x12   :  { %488 = dma.done.wait [#allocation5], 512  }
  0x13   :  { %489 = vsyncadd [#allocation5], 4294966784 }
  0x14   :  { %490 = dma.done.wait [#allocation8], 1024  }
  0x15   :  { %491 = vsyncadd [#allocation8], 4294966272  ;;  %v116_v0 = vld [vmem:[#allocation7 + $0x18] sm:$0xff]  ;;  %v115_v1 = vld [vmem:[#allocation7 + $0x10] sm:$0xff]  ;;  %vm126_vm0 = vcmask 261120   ;;  %vm217_vm1 = vcmask 64512  }
  0x16   :  { %v120_v2 = vld [vmem:[#allocation9 + $0x18] sm:$0xff]  ;;  %145 = vmatpush.msra.mxu0 %v116_v0  ;;  %174 = vmatpush.msra.mxu1 %v116_v0  ;;  %v119_v3 = vld [vmem:[#allocation9 + $0x10] sm:$0xff]  ;;  %v114_v4 = vld [vmem:[#allocation7 + $0x8] sm:$0xff]  ;;  %s499_s14 = smov 112   ;;  %s500_s15 = smov 120  }
  0x17   :  { %206 = vmatpush.msra.mxu2 %v120_v2  ;;  %350 = vmatpush.msra.mxu3 %v116_v0  ;;  %v118_v5 = vld [vmem:[#allocation9 + $0x8] sm:$0xff]  ;;  %v113_v6 = vld [vmem:[#allocation7] sm:$0xff]  ;;  %v107_v7 = vld [vmem:[#allocation2] sm:$0xff]  ;;  %s501_s1 = smov 104  }
  0x18   :  { %146 = vmatpush.msra.mxu0 %v115_v1  ;;  %175 = vmatpush.msra.mxu1 %v115_v1  ;;  %v111_v8 = vld [vmem:[#allocation6] sm:$0xff]  ;;  %v117_v9 = vld [vmem:[#allocation9] sm:$0xff]  ;;  %v108_v11 = vld [vmem:[#allocation2 + $0x8] sm:$0xff] }
  0x19   :  { %207 = vmatpush.msra.mxu2 %v119_v3  ;;  %351 = vmatpush.msra.mxu3 %v115_v1  ;;  %v109_v10 = vld [vmem:[#allocation4] sm:$0xff]  ;;  %v112_v12 = vld [vmem:[#allocation6 + $0x8] sm:$0xff]  ;;  %v110_v13 = vld [vmem:[#allocation4 + $0x8] sm:$0xff] }
  0x1a   :  { %147 = vmatpush.msra.mxu0 %v114_v4  ;;  %176 = vmatpush.msra.mxu1 %v114_v4  ;;  %v364_v14 = vld [vmem:[%s686_s5] ss:$0 sm:$0xff] }
  0x1b   :  { %208 = vmatpush.msra.mxu2 %v118_v5  ;;  %352 = vmatpush.msra.mxu3 %v114_v4  ;;  %v365_v19 = vld [vmem:[%s687_s6] ss:$0 sm:$0xff] }
  0x1c   :  { %148 = vmatpush.msra.mxu0 %v113_v6  ;;  %177 = vmatpush.msra.mxu1 %v113_v6 }
  0x1d   :  { %326 = vmatmul.msk.f32.vlgmr.msra.gmra.mxu0 %vm126_vm0, %v107_v7  ;;  %328 = vmatmul.msk.f32.vlgmr.msra.gmra.mxu1 %vm126_vm0, %v111_v8 }
  0x1e   :  { %209 = vmatpush.msra.mxu2 %v117_v9  ;;  %353 = vmatpush.msra.mxu3 %v113_v6 }
  0x1f   :  { %330 = vmatmul.msk.f32.vlgmr.msra.gmra.mxu2 %vm126_vm0, %v109_v10  ;;  %327 = vmatmul.msk.f32.vlgmr.msra.gmra.mxu3 %vm126_vm0, %v108_v11 }
  0x25   :  { %329 = vmatmul.msk.f32.gmra.mxu1 %vm126_vm0, %v112_v12 }
  0x27   :  { %331 = vmatmul.msk.f32.gmra.mxu2 %vm126_vm0, %v110_v13 }
  0x9a   :  { %v150_v15 = vpop.f32.mrf.mxu0  ;;  %v179_v16 = vpop.f32.mrf.mxu1 }
  0x9b   :  { %v151_v17 = vadd.f32 %v364_v14, %v150_v15  ;;  %v180_v18 = vadd.f32 %v364_v14, %v179_v16 }
  0x9d   :  { %218 = vst.msk [vmem:[%s688_s7] sm:$0xff] %vm217_vm1, %v151_v17  ;;  %275 = vrot.lane.b32.xlu1 %v180_v18, %s499_s14  ;;  %248 = vrot.lane.b32.xlu2 %v180_v18, %s500_s15 }
  0x9e   :  { %222 = vst.msk [vmem:[%s690_s9] sm:$0xff] %vm217_vm1, %v180_v18  ;;  %226 = vrot.lane.b32.xlu0 %v151_v17, %s500_s15 }
  0xa2   :  { %v211_v20 = vpop.f32.mrf.mxu2  ;;  %v153_v21 = vpop.f32.mrf.mxu3 }
  0xa3   :  { %v212_v22 = vadd.f32 %v365_v19, %v211_v20  ;;  %v154_v23 = vadd.f32 %v364_v14, %v153_v21  ;;  %v182_v24 = vpop.f32.mrf.mxu1 }
  0xa4   :  { %v183_v25 = vadd.f32 %v364_v14, %v182_v24 }
  0xa5   :  { %220 = vst.msk [vmem:[%s689_s8] sm:$0xff] %vm217_vm1, %v212_v22  ;;  %266 = vrot.lane.b32.xlu2 %v212_v22, %s499_s14  ;;  %237 = vrot.lane.b32.xlu1 %v212_v22, %s500_s15 }
  0xa6   :  { %257 = vrot.lane.b32.xlu0 %v151_v17, %s499_s14  ;;  %219 = vst.msk [vmem:[%s688_s7 + $0x8] sm:$0xff] %vm217_vm1, %v154_v23 }
  0xa7   :  { %223 = vst.msk [vmem:[%s690_s9 + $0x8] sm:$0xff] %vm217_vm1, %v183_v25 }
  0xaa   :  { %v214_v26 = vpop.f32.mrf.mxu2 }
  0xab   :  { %v215_v27 = vadd.f32 %v365_v19, %v214_v26 }
  0xad   :  { %293 = vrot.lane.b32.xlu2 %v212_v22, %s501_s1  ;;  %259 = vrot.lane.b32.xlu1 %v154_v23, %s499_s14  ;;  %221 = vst.msk [vmem:[%s689_s8 + $0x8] sm:$0xff] %vm217_vm1, %v215_v27 }
  0xae   :  { %284 = vrot.lane.b32.xlu0 %v151_v17, %s501_s1 }
  0xb5   :  { %286 = vrot.lane.b32.xlu1 %v154_v23, %s501_s1  ;;  %250 = vrot.lane.b32.xlu2 %v183_v25, %s500_s15 }
  0xb6   :  { %228 = vrot.lane.b32.xlu0 %v154_v23, %s500_s15 }
  0xbd   :  { %239 = vrot.lane.b32.xlu1 %v215_v27, %s500_s15  ;;  %277 = vrot.lane.b32.xlu2 %v183_v25, %s499_s14 }
  0xbe   :  { %268 = vrot.lane.b32.xlu0 %v215_v27, %s499_s14 }
  0xc5   :  { %302 = vrot.lane.b32.xlu1 %v180_v18, %s501_s1  ;;  %304 = vrot.lane.b32.xlu2 %v183_v25, %s501_s1 }
  0xc6   :  { %295 = vrot.lane.b32.xlu0 %v215_v27, %s501_s1 }
  0xf7   :  { %v249_v28 = vpop.permute.xlu2 %248 }
  0xf8   :  { %336 = vst.msk [vmem:[%s690_s9 + $0x10] sm:$0xff] %vm217_vm1, %v249_v28 }
  0xff   :  { %v267_v29 = vpop.permute.xlu2 %266 }
 0x100   :  { %340 = vst.msk [vmem:[%s689_s8 + $0x20] sm:$0xff] %vm217_vm1, %v267_v29 }
 0x107   :  { %v294_v30 = vpop.permute.xlu2 %293 }
 0x108   :  { %346 = vst.msk [vmem:[%s689_s8 + $0x30] sm:$0xff] %vm217_vm1, %v294_v30 }
 0x10f   :  { %v276_v31 = vpop.permute.xlu1 %275  ;;  %v251_v32 = vpop.permute.xlu2 %250 }
 0x110   :  { %342 = vst.msk [vmem:[%s690_s9 + $0x20] sm:$0xff] %vm217_vm1, %v276_v31  ;;  %v227_v33 = vpop.permute.xlu0 %226 }
 0x111   :  { %332 = vst.msk [vmem:[%s688_s7 + $0x10] sm:$0xff] %vm217_vm1, %v227_v33 }
 0x112   :  { %337 = vst.msk [vmem:[%s690_s9 + $0x18] sm:$0xff] %vm217_vm1, %v251_v32 }
 0x117   :  { %v238_v34 = vpop.permute.xlu1 %237  ;;  %v278_v35 = vpop.permute.xlu2 %277 }
 0x118   :  { %334 = vst.msk [vmem:[%s689_s8 + $0x10] sm:$0xff] %vm217_vm1, %v238_v34  ;;  %v258_v36 = vpop.permute.xlu0 %257 }
 0x119   :  { %338 = vst.msk [vmem:[%s688_s7 + $0x20] sm:$0xff] %vm217_vm1, %v258_v36 }
 0x11a   :  { %343 = vst.msk [vmem:[%s690_s9 + $0x28] sm:$0xff] %vm217_vm1, %v278_v35 }
 0x11f   :  { %v260_v37 = vpop.permute.xlu1 %259  ;;  %v305_v38 = vpop.permute.xlu2 %304 }
 0x120   :  { %339 = vst.msk [vmem:[%s688_s7 + $0x28] sm:$0xff] %vm217_vm1, %v260_v37  ;;  %v285_v39 = vpop.permute.xlu0 %284 }
 0x121   :  { %344 = vst.msk [vmem:[%s688_s7 + $0x30] sm:$0xff] %vm217_vm1, %v285_v39 }
 0x122   :  { %349 = vst.msk [vmem:[%s690_s9 + $0x38] sm:$0xff] %vm217_vm1, %v305_v38 }
 0x127   :  { %v287_v40 = vpop.permute.xlu1 %286 }
 0x128   :  { %345 = vst.msk [vmem:[%s688_s7 + $0x38] sm:$0xff] %vm217_vm1, %v287_v40  ;;  %v229_v41 = vpop.permute.xlu0 %228 }
 0x129   :  { %333 = vst.msk [vmem:[%s688_s7 + $0x18] sm:$0xff] %vm217_vm1, %v229_v41 }
 0x12f   :  { %v240_v42 = vpop.permute.xlu1 %239 }
 0x130   :  { %335 = vst.msk [vmem:[%s689_s8 + $0x18] sm:$0xff] %vm217_vm1, %v240_v42  ;;  %v269_v43 = vpop.permute.xlu0 %268 }
 0x131   :  { %341 = vst.msk [vmem:[%s689_s8 + $0x28] sm:$0xff] %vm217_vm1, %v269_v43 }
 0x137   :  { %v303_v44 = vpop.permute.xlu1 %302 }
 0x138   :  { %348 = vst.msk [vmem:[%s690_s9 + $0x30] sm:$0xff] %vm217_vm1, %v303_v44  ;;  %v296_v45 = vpop.permute.xlu0 %295 }
 0x139   :  { %347 = vst.msk [vmem:[%s689_s8 + $0x38] sm:$0xff] %vm217_vm1, %v296_v45 }
 0x13a   :  { %323 = vsyncpa [#allocation3], 1 }
 0x13b   :  { %324 = vsyncpa [#allocation5], 1 }
 0x13c   :  { %325 = vsyncpa [#allocation8], 1 }

</bundles_post_ra>
